<compile_context>
chip_gen: v7x
topology: tpu7x:2x2x1
jax: 0.10.0
libtpu: 0.0.40
codegen_flags: <defaults>
</compile_context>

<pallas_src>
import numpy as np
import jax
import jax.numpy as jnp
from jax.experimental import pallas as pl
from jax.experimental.pallas import tpu as pltpu

# ---- module hyper-parameters (from the PyTorch spec) -------------------------
D_MODEL = 200
NUM_GROUPS = 2
NUM_HEADS = 20
HEAD_DIM = D_MODEL // NUM_HEADS          # 10
SCALE = HEAD_DIM ** -0.5
KV_COLS = 2 * NUM_GROUPS * HEAD_DIM      # 40 (k columns | v columns)

# ---- lane-padded kernel geometry ---------------------------------------------
DP = 256                 # d_model padded to a 128-lane multiple (2 vregs)
KVP = 128                # packed k|v slab padded to one 128-lane vreg
PROJ_COLS = DP + KVP     # 384: [ Wq.T*scale | 0 | Wkv.T | 0 ]
TILE_COLS = 3 * DP       # 768: [ kt0-kt1 | vt0-vt1 | vt1 ]


def _round_up(a, b):
    return (a + b - 1) // b * b


def _build_constants():
    c = np.arange(DP)
    d = np.arange(HEAD_DIM)
    # T[d, c] = 1 if c % head_dim == d and c < 200:
    # tiles a length-10 group vector across all 20 head blocks.
    T = (((c[None, :] % HEAD_DIM) == d[:, None]) & (c[None, :] < D_MODEL)).astype(np.float32)

    # One (128, 768) matrix applied to the packed [k0|k1|v0|v1|0...] slab:
    #   cols   0..255 : kt0 - kt1   (tiled across heads)
    #   cols 256..511 : vt0 - vt1
    #   cols 512..767 : vt1
    T_all = np.zeros((KVP, TILE_COLS), np.float32)
    T_all[0 * HEAD_DIM:1 * HEAD_DIM, 0:DP] = T           # +k0
    T_all[1 * HEAD_DIM:2 * HEAD_DIM, 0:DP] = -T          # -k1
    T_all[2 * HEAD_DIM:3 * HEAD_DIM, DP:2 * DP] = T      # +v0
    T_all[3 * HEAD_DIM:4 * HEAD_DIM, DP:2 * DP] = -T     # -v1
    T_all[3 * HEAD_DIM:4 * HEAD_DIM, 2 * DP:3 * DP] = T  # +v1

    # P[c, h] = 1 if c // head_dim == h : per-head segmented sum (256, 20).
    P = (((c[:, None] // HEAD_DIM) == np.arange(NUM_HEADS)[None, :])
         & (c[:, None] < D_MODEL)).astype(np.float32)
    return T_all, P, np.ascontiguousarray(P.T)


_T_ALL_NP, _P_NP, _PT_NP = _build_constants()


def gqa_row_tile_kernel(x_ref, wproj_ref, tall_ref, p_ref, pt_ref,
                        ctx_ref, kv_ref):
    """One tile of TM flattened (B*S) token rows.

    x_ref     : (TM, 200)   input tokens
    wproj_ref : (200, 384)  [Wq.T*scale | 0 | Wkv.T | 0]  (lane-aligned segments)
    tall_ref  : (128, 768)  packed head-tiling matrix for the k|v slab
    p_ref     : (256, 20)   per-head segmented-sum matrix
    pt_ref    : (20, 256)   per-head broadcast matrix
    ctx_ref   : (TM, 256)   attention context, head-minor (cols 200.. are zero)
    kv_ref    : (TM, 128)   packed k|v (cols 40.. are zero)
    """
    f32 = jnp.float32
    x = x_ref[...]

    # Fused q / kv projection: single shared-LHS MXU matmul.
    proj = jnp.dot(x, wproj_ref[...], preferred_element_type=f32)     # (TM, 384)
    q = proj[:, :DP]              # scaled q, head-minor; cols 200..255 are zero
    kv = proj[:, DP:]             # packed k|v slab; cols 40..127 are zero
    kv_ref[...] = kv.astype(kv_ref.dtype)                             # lane-dense store

    # Tile the group vectors across the 20 head blocks with one thin matmul.
    tiled = jnp.dot(kv, tall_ref[...], preferred_element_type=f32)    # (TM, 768)
    dk = tiled[:, 0:DP]           # kt0 - kt1
    dv = tiled[:, DP:2 * DP]      # vt0 - vt1
    v1t = tiled[:, 2 * DP:]       # vt1

    # Per-position 2-group softmax == sigmoid of the logit difference (exact).
    l_diff = jnp.dot(q * dk, p_ref[...], preferred_element_type=f32)  # (TM, 20)
    w0 = 1.0 / (1.0 + jnp.exp(-l_diff))                               # softmax weight of group 0
    w0b = jnp.dot(w0, pt_ref[...], preferred_element_type=f32)        # broadcast per head block

    ctx_ref[...] = (v1t + w0b * dv).astype(ctx_ref.dtype)             # lane-dense store


def _gqa_forward(x, wq, wkv, wo):
    """x: (B, S, 200) f32. wq/wkv/wo are the PyTorch nn.Linear .weight tensors (out, in)."""
    B, S, _ = x.shape
    N = B * S
    TM = 256 if N >= 256 else _round_up(N, 8)
    N_pad = _round_up(N, TM)

    x_flat = x.reshape(N, D_MODEL)
    if N_pad != N:
        x_flat = jnp.pad(x_flat, ((0, N_pad - N), (0, 0)))

    # Packed projection weight (200, 384): q segment padded to 256 cols,
    # kv segment padded to 128 cols, softmax scale folded into Wq.
    wq_seg = jnp.pad(wq.T.astype(jnp.float32) * SCALE, ((0, 0), (0, DP - D_MODEL)))
    wkv_seg = jnp.pad(wkv.T.astype(jnp.float32), ((0, 0), (0, KVP - KV_COLS)))
    wproj = jnp.concatenate([wq_seg, wkv_seg], axis=1)                 # (200, 384)

    t_all = jnp.asarray(_T_ALL_NP)
    p_mat = jnp.asarray(_P_NP)
    pt_mat = jnp.asarray(_PT_NP)

    grid = (N_pad // TM,)
    grid_spec = pltpu.PrefetchScalarGridSpec(
        num_scalar_prefetch=0,
        grid=grid,
        in_specs=[
            pl.BlockSpec((TM, D_MODEL), lambda i: (i, 0)),            # x (row-tiled)
            pl.BlockSpec((D_MODEL, PROJ_COLS), lambda i: (0, 0)),     # packed projection weight
            pl.BlockSpec((KVP, TILE_COLS), lambda i: (0, 0)),         # head-tiling matrix
            pl.BlockSpec((DP, NUM_HEADS), lambda i: (0, 0)),          # P
            pl.BlockSpec((NUM_HEADS, DP), lambda i: (0, 0)),          # P.T
        ],
        out_specs=[
            pl.BlockSpec((TM, DP), lambda i: (i, 0)),                 # ctx (head-minor)
            pl.BlockSpec((TM, KVP), lambda i: (i, 0)),                # packed k|v
        ],
    )
    ctx_pad, kv_pad = pl.pallas_call(
        gqa_row_tile_kernel,
        grid_spec=grid_spec,
        out_shape=(
            jax.ShapeDtypeStruct((N_pad, DP), jnp.float32),
            jax.ShapeDtypeStruct((N_pad, KVP), jnp.float32),
        ),
        compiler_params=pltpu.CompilerParams(dimension_semantics=("parallel",)),
    )(x_flat, wproj, t_all, p_mat, pt_mat)

    ctx = ctx_pad[:N, :D_MODEL]
    kvf = kv_pad[:N, :KV_COLS]
    k = kvf[:, :NUM_GROUPS * HEAD_DIM].reshape(B, S, NUM_GROUPS, HEAD_DIM)
    v = kvf[:, NUM_GROUPS * HEAD_DIM:].reshape(B, S, NUM_GROUPS, HEAD_DIM)

    # transpose(1,2).contiguous().view(B, S, d_model) + out_proj, done in XLA
    # (cheap row/block permutation; keeping it out of the kernel removes the
    # O(H*N^2) selector matmuls flagged by the perf review).
    attn = ctx.reshape(B, S, NUM_HEADS, HEAD_DIM).transpose(0, 2, 1, 3).reshape(B, S, D_MODEL)
    out = attn @ wo.T
    # TODO(synk): past_kv (incremental-decode cache concat) branch not implemented;
    # this covers the forward with past_kv=None exactly as in the PyTorch module.
    return out, (k, v)


grouped_query_attention = jax.jit(_gqa_forward)


def reference_forward(x, wq, wkv, wo):
    """Pure-JAX mirror of the PyTorch forward (past_kv=None)."""
    B, S, _ = x.shape
    q = (x @ wq.T).reshape(B, S, NUM_HEADS, HEAD_DIM)
    kv = x @ wkv.T
    k = kv[..., :NUM_GROUPS * HEAD_DIM].reshape(B, S, NUM_GROUPS, HEAD_DIM)
    v = kv[..., NUM_GROUPS * HEAD_DIM:].reshape(B, S, NUM_GROUPS, HEAD_DIM)
    attn = jnp.einsum('bshd,bsgd->bshg', q, k) * SCALE
    attn = jax.nn.softmax(attn, axis=-1)
    out = jnp.einsum('bshg,bsgd->bshd', attn, v)
    out = out.transpose(0, 2, 1, 3).reshape(B, S, D_MODEL)
    return out @ wo.T, (k, v)


if __name__ == "__main__":
    B, S = 2, 8
    key = jax.random.PRNGKey(0)
    kx, kq, kkv, ko = jax.random.split(key, 4)

    x = jax.random.normal(kx, (B, S, D_MODEL), dtype=jnp.float32)
    # Deterministic synthetic weights (same shapes as the nn.Linear .weight tensors).
    wq = jax.random.normal(kq, (D_MODEL, D_MODEL), dtype=jnp.float32) * 0.05
    wkv = jax.random.normal(kkv, (KV_COLS, D_MODEL), dtype=jnp.float32) * 0.05
    wo = jax.random.normal(ko, (D_MODEL, D_MODEL), dtype=jnp.float32) * 0.05

    out, (k, v) = grouped_query_attention(x, wq, wkv, wo)
    jax.block_until_ready(out)
    jax.block_until_ready(k)
    jax.block_until_ready(v)

    out_ref, (k_ref, v_ref) = reference_forward(x, wq, wkv, wo)
    # Everything is exact f32 math now (sigmoid replaces the approx reciprocal),
    # so tolerances are tight.
    np.testing.assert_allclose(np.asarray(k), np.asarray(k_ref), rtol=1e-4, atol=1e-4)
    np.testing.assert_allclose(np.asarray(v), np.asarray(v_ref), rtol=1e-4, atol=1e-4)
    np.testing.assert_allclose(np.asarray(out), np.asarray(out_ref), rtol=1e-3, atol=1e-3)

    print("KERNEL_OK")
</pallas_src>

<mosaic_0001>
module attributes {stable_mosaic.version = 11 : i64} {
  func.func @gqa_row_tile_kernel(%arg0: i32, %arg1: memref<16x200xf32, #tpu.memory_space<vmem>>, %arg2: memref<200x384xf32, #tpu.memory_space<vmem>>, %arg3: memref<128x768xf32, #tpu.memory_space<vmem>>, %arg4: memref<256x20xf32, #tpu.memory_space<vmem>>, %arg5: memref<20x256xf32, #tpu.memory_space<vmem>>, %arg6: memref<16x256xf32, #tpu.memory_space<vmem>>, %arg7: memref<16x128xf32, #tpu.memory_space<vmem>>) attributes {dimension_semantics = [#tpu.dimension_semantics<parallel>], iteration_bounds = array<i64: 1>, scalar_prefetch = 0 : i64, scratch_operands = 0 : i64, tpu.core_type = #tpu.core_type<tc>, window_params = [{transform_indices = @transform_0, window_bounds = array<i64: 16, 200>}, {pipeline_mode = #tpu.pipeline_mode<synchronous>, transform_indices = @transform_1, window_bounds = array<i64: 200, 384>}, {pipeline_mode = #tpu.pipeline_mode<synchronous>, transform_indices = @transform_2, window_bounds = array<i64: 128, 768>}, {pipeline_mode = #tpu.pipeline_mode<synchronous>, transform_indices = @transform_3, window_bounds = array<i64: 256, 20>}, {pipeline_mode = #tpu.pipeline_mode<synchronous>, transform_indices = @transform_4, window_bounds = array<i64: 20, 256>}, {transform_indices = @transform_5, window_bounds = array<i64: 16, 256>}, {transform_indices = @transform_6, window_bounds = array<i64: 16, 128>}]} {
    %c0 = arith.constant 0 : index
    %c0_0 = arith.constant 0 : index
    %0 = vector.load %arg1[%c0, %c0_0] : memref<16x200xf32, #tpu.memory_space<vmem>>, vector<16x200xf32>
    %c0_1 = arith.constant 0 : index
    %c0_2 = arith.constant 0 : index
    %1 = vector.load %arg2[%c0_1, %c0_2] : memref<200x384xf32, #tpu.memory_space<vmem>>, vector<200x384xf32>
    %cst = arith.constant dense<0.000000e+00> : vector<16x384xf32>
    %2 = tpu.matmul %0, %1, %cst {dimension_numbers = #tpu.dot_dimension_numbers<[1], [0], [0], [1], [0, 0, 1, 1], [], []>} : vector<16x200xf32>, vector<200x384xf32>, vector<16x384xf32> -> vector<16x384xf32>
    %3 = vector.extract_strided_slice %2 {offsets = [0, 0], sizes = [16, 256], strides = [1, 1]} : vector<16x384xf32> to vector<16x256xf32>
    %4 = vector.extract_strided_slice %2 {offsets = [0, 256], sizes = [16, 128], strides = [1, 1]} : vector<16x384xf32> to vector<16x128xf32>
    %c0_3 = arith.constant 0 : index
    %c0_4 = arith.constant 0 : index
    %5 = vector.load %arg7[%c0_3, %c0_4] : memref<16x128xf32, #tpu.memory_space<vmem>>, vector<16x128xf32>
    tpu.vector_store %arg7[%c0_3, %c0_4], %4 {strides = array<i32>} : memref<16x128xf32, #tpu.memory_space<vmem>>, vector<16x128xf32>,
    %c0_5 = arith.constant 0 : index
    %c0_6 = arith.constant 0 : index
    %6 = vector.load %arg3[%c0_5, %c0_6] : memref<128x768xf32, #tpu.memory_space<vmem>>, vector<128x768xf32>
    %cst_7 = arith.constant dense<0.000000e+00> : vector<16x768xf32>
    %7 = tpu.matmul %4, %6, %cst_7 {dimension_numbers = #tpu.dot_dimension_numbers<[1], [0], [0], [1], [0, 0, 1, 1], [], []>} : vector<16x128xf32>, vector<128x768xf32>, vector<16x768xf32> -> vector<16x768xf32>
    %8 = vector.extract_strided_slice %7 {offsets = [0, 0], sizes = [16, 256], strides = [1, 1]} : vector<16x768xf32> to vector<16x256xf32>
    %9 = vector.extract_strided_slice %7 {offsets = [0, 256], sizes = [16, 256], strides = [1, 1]} : vector<16x768xf32> to vector<16x256xf32>
    %10 = vector.extract_strided_slice %7 {offsets = [0, 512], sizes = [16, 256], strides = [1, 1]} : vector<16x768xf32> to vector<16x256xf32>
    %11 = arith.mulf %3, %8 : vector<16x256xf32>
    %c0_8 = arith.constant 0 : index
    %c0_9 = arith.constant 0 : index
    %12 = vector.load %arg4[%c0_8, %c0_9] : memref<256x20xf32, #tpu.memory_space<vmem>>, vector<256x20xf32>
    %cst_10 = arith.constant dense<0.000000e+00> : vector<16x20xf32>
    %13 = tpu.matmul %11, %12, %cst_10 {dimension_numbers = #tpu.dot_dimension_numbers<[1], [0], [0], [1], [0, 0, 1, 1], [], []>} : vector<16x256xf32>, vector<256x20xf32>, vector<16x20xf32> -> vector<16x20xf32>
    %cst_11 = arith.constant 0.000000e+00 : f32
    %14 = vector.broadcast %cst_11 : f32 to vector<16x20xf32>
    %15 = arith.subf %14, %13 : vector<16x20xf32>
    %16 = math.exp %15 : vector<16x20xf32>
    %cst_12 = arith.constant 1.000000e+00 : f32
    %17 = vector.broadcast %cst_12 : f32 to vector<16x20xf32>
    %18 = arith.addf %17, %16 : vector<16x20xf32>
    %cst_13 = arith.constant 1.000000e+00 : f32
    %19 = vector.broadcast %cst_13 : f32 to vector<16x20xf32>
    %20 = arith.divf %19, %18 : vector<16x20xf32>
    %c0_14 = arith.constant 0 : index
    %c0_15 = arith.constant 0 : index
    %21 = vector.load %arg5[%c0_14, %c0_15] : memref<20x256xf32, #tpu.memory_space<vmem>>, vector<20x256xf32>
    %cst_16 = arith.constant dense<0.000000e+00> : vector<16x256xf32>
    %22 = tpu.matmul %20, %21, %cst_16 {dimension_numbers = #tpu.dot_dimension_numbers<[1], [0], [0], [1], [0, 0, 1, 1], [], []>} : vector<16x20xf32>, vector<20x256xf32>, vector<16x256xf32> -> vector<16x256xf32>
    %23 = arith.mulf %22, %9 : vector<16x256xf32>
    %24 = arith.addf %10, %23 : vector<16x256xf32>
    %c0_17 = arith.constant 0 : index
    %c0_18 = arith.constant 0 : index
    %25 = vector.load %arg6[%c0_17, %c0_18] : memref<16x256xf32, #tpu.memory_space<vmem>>, vector<16x256xf32>
    tpu.vector_store %arg6[%c0_17, %c0_18], %24 {strides = array<i32>} : memref<16x256xf32, #tpu.memory_space<vmem>>, vector<16x256xf32>,
    return
  }
  func.func @transform_0(%arg0: i32) -> (i32, i32) {
    %c0_i32 = arith.constant 0 : i32
    %c0_i32_0 = arith.constant 0 : i32
    return %arg0, %c0_i32 : i32, i32
  }
  func.func @transform_1(%arg0: i32) -> (i32, i32) {
    %c0_i32 = arith.constant 0 : i32
    %c0_i32_0 = arith.constant 0 : i32
    %c0_i32_1 = arith.constant 0 : i32
    return %c0_i32, %c0_i32_0 : i32, i32
  }
  func.func @transform_2(%arg0: i32) -> (i32, i32) {
    %c0_i32 = arith.constant 0 : i32
    %c0_i32_0 = arith.constant 0 : i32
    %c0_i32_1 = arith.constant 0 : i32
    return %c0_i32, %c0_i32_0 : i32, i32
  }
  func.func @transform_3(%arg0: i32) -> (i32, i32) {
    %c0_i32 = arith.constant 0 : i32
    %c0_i32_0 = arith.constant 0 : i32
    %c0_i32_1 = arith.constant 0 : i32
    return %c0_i32, %c0_i32_0 : i32, i32
  }
  func.func @transform_4(%arg0: i32) -> (i32, i32) {
    %c0_i32 = arith.constant 0 : i32
    %c0_i32_0 = arith.constant 0 : i32
    %c0_i32_1 = arith.constant 0 : i32
    return %c0_i32, %c0_i32_0 : i32, i32
  }
  func.func @transform_5(%arg0: i32) -> (i32, i32) {
    %c0_i32 = arith.constant 0 : i32
    %c0_i32_0 = arith.constant 0 : i32
    return %arg0, %c0_i32 : i32, i32
  }
  func.func @transform_6(%arg0: i32) -> (i32, i32) {
    %c0_i32 = arith.constant 0 : i32
    %c0_i32_0 = arith.constant 0 : i32
    return %arg0, %c0_i32 : i32, i32
  }
}

</mosaic_0001>

<bundles_post_ra>
// kernel: _gqa_forward.1
= control target key start
LH: loop header
LB: loop body
LE: loop exit
PB: predicated region body
PF: predicated region fallthrough
CT: control target
= control target key end

     0   :  { %v1105_v0 = vmov 0.0|0.0   ;;  %vm101_vm0 = vcmask 588800   ;;  %vm725_vm1 = vcmask 1043456   ;;  %vm718_vm2 = vcmask 162816   ;;  %s1860_s1 = inlined_call_operand.vmem [shape: f32[200,384], index: 1, kind: input, shape index: {}]   ;;  %s1861_s0 = inlined_call_operand.vmem [shape: f32[16,200], index: 0, kind: input, shape index: {}]   ;;  %s1862_s2 = inlined_call_operand.vmem [shape: f32[128,768], index: 2, kind: input, shape index: {}]   ;;  %s1863_s3 = inlined_call_operand.vmem [shape: f32[256,20], index: 3, kind: input, shape index: {}]   ;;  %s1864_s6 = inlined_call_operand.vmem [shape: f32[16,128], index: 6, kind: output, shape index: {1}]   ;;  %s1865_s4 = inlined_call_operand.vmem [shape: f32[20,256], index: 4, kind: input, shape index: {}]   ;;  %s1866_s5 = inlined_call_operand.vmem [shape: f32[16,256], index: 5, kind: output, shape index: {0}]  }
   0x1   :  { %923 = vmatprep.subr.bf16.mxu1 %v1105_v0  ;;  %v28_v1 = vld [vmem:[%s1860_s1 + $0x10] sm:$0xff]  ;;  %v31_v2 = vld [vmem:[%s1860_s1 + $0x28] sm:$0xff]  ;;  %v34_v3 = vld [vmem:[%s1860_s1 + $0x40] sm:$0xff] }
   0x2   :  { %v924_v4 = vpack.c.bf16 %v31_v2, %v28_v1  ;;  %v37_v5 = vld [vmem:[%s1860_s1 + $0x58] sm:$0xff]  ;;  %v40_v7 = vld [vmem:[%s1860_s1 + $0x70] sm:$0xff]  ;;  %v43_v8 = vld [vmem:[%s1860_s1 + $0x88] sm:$0xff] }
   0x3   :  { %v927_v6 = vpack.c.bf16 %v37_v5, %v34_v3  ;;  %v930_v9 = vpack.c.bf16 %v43_v8, %v40_v7  ;;  %v46_v10 = vld [vmem:[%s1860_s1 + $0xa0] sm:$0xff]  ;;  %v49_v11 = vld [vmem:[%s1860_s1 + $0xb8] sm:$0xff]  ;;  %v23_v12 = vld [vmem:[%s1861_s0 + $0x8] sm:$0xff] }
   0x4   :  { %925 = vmatpush1.bf16.msra.mxu1 %v924_v4  ;;  %831 = vmatprep.mubr.msk.f32.mxu1 %vm101_vm0, %v23_v12  ;;  %v27_v13 = vld [vmem:[%s1860_s1 + $0x8] sm:$0xff]  ;;  %v52_v14 = vld [vmem:[%s1860_s1 + $0xd0] sm:$0xff]  ;;  %v30_v16 = vld [vmem:[%s1860_s1 + $0x20] sm:$0xff]  ;;  %v933_v19 = vpack.c.bf16 %v49_v11, %v46_v10 }
   0x5   :  { %926 = vmatprep.subr.bf16.mxu1 %v1105_v0  ;;  %829 = vmatprep.mubr.msk.f32.mxu0 %vm101_vm0, %v23_v12  ;;  %v55_v15 = vld [vmem:[%s1860_s1 + $0xe8] sm:$0xff]  ;;  %v26_v17 = vld [vmem:[%s1860_s1] sm:$0xff]  ;;  %v29_v18 = vld [vmem:[%s1860_s1 + $0x18] sm:$0xff]  ;;  %v875_v20 = vpack.c.bf16 %v30_v16, %v27_v13 }
   0x6   :  { %v877_v21 = vpack.c.bf16 %v29_v18, %v26_v17  ;;  %v33_v22 = vld [vmem:[%s1860_s1 + $0x38] sm:$0xff]  ;;  %v36_v23 = vld [vmem:[%s1860_s1 + $0x50] sm:$0xff]  ;;  %v35_v26 = vld [vmem:[%s1860_s1 + $0x48] sm:$0xff]  ;;  %v936_v30 = vpack.c.bf16 %v55_v15, %v52_v14 }
   0x7   :  { %v32_v24 = vld [vmem:[%s1860_s1 + $0x30] sm:$0xff]  ;;  %v879_v25 = vpack.c.bf16 %v36_v23, %v33_v22  ;;  %v39_v27 = vld [vmem:[%s1860_s1 + $0x68] sm:$0xff]  ;;  %v42_v28 = vld [vmem:[%s1860_s1 + $0x80] sm:$0xff]  ;;  %876 = vmatprep.subr.bf16.mxu0 %v875_v20 }
   0x8   :  { %928 = vmatpush1.bf16.msra.mxu1 %v927_v6  ;;  %878 = vmatpush1.bf16.msra.mxu0 %v877_v21  ;;  %v881_v29 = vpack.c.bf16 %v35_v26, %v32_v24  ;;  %v58_v31 = vld [vmem:[%s1860_s1 + $0x100] sm:$0xff]  ;;  %v883_v32 = vpack.c.bf16 %v42_v28, %v39_v27  ;;  %v41_v34 = vld [vmem:[%s1860_s1 + $0x78] sm:$0xff]  ;;  %v48_v37 = vld [vmem:[%s1860_s1 + $0xb0] sm:$0xff] }
   0x9   :  { %929 = vmatprep.subr.bf16.mxu1 %v1105_v0  ;;  %880 = vmatprep.subr.bf16.mxu0 %v879_v25  ;;  %v38_v33 = vld [vmem:[%s1860_s1 + $0x60] sm:$0xff]  ;;  %v61_v35 = vld [vmem:[%s1860_s1 + $0x118] sm:$0xff]  ;;  %v64_v40 = vld [vmem:[%s1860_s1 + $0x130] sm:$0xff] }
   0xa   :  { %v45_v36 = vld [vmem:[%s1860_s1 + $0x98] sm:$0xff]  ;;  %v885_v38 = vpack.c.bf16 %v41_v34, %v38_v33  ;;  %v939_v39 = vpack.c.bf16 %v61_v35, %v58_v31  ;;  %v44_v42 = vld [vmem:[%s1860_s1 + $0x90] sm:$0xff]  ;;  %v47_v43 = vld [vmem:[%s1860_s1 + $0xa8] sm:$0xff] }
   0xb   :  { %v887_v41 = vpack.c.bf16 %v48_v37, %v45_v36  ;;  %v67_v44 = vld [vmem:[%s1860_s1 + $0x148] sm:$0xff]  ;;  %v54_v46 = vld [vmem:[%s1860_s1 + $0xe0] sm:$0xff]  ;;  %v889_v47 = vpack.c.bf16 %v47_v43, %v44_v42  ;;  %v53_v52 = vld [vmem:[%s1860_s1 + $0xd8] sm:$0xff] }
   0xc   :  { %931 = vmatpush1.bf16.msra.mxu1 %v930_v9  ;;  %882 = vmatpush1.bf16.msra.mxu0 %v881_v29  ;;  %v51_v45 = vld [vmem:[%s1860_s1 + $0xc8] sm:$0xff]  ;;  %v942_v48 = vpack.c.bf16 %v67_v44, %v64_v40  ;;  %v70_v49 = vld [vmem:[%s1860_s1 + $0x160] sm:$0xff]  ;;  %v73_v53 = vld [vmem:[%s1860_s1 + $0x178] sm:$0xff] }
   0xd   :  { %932 = vmatprep.subr.bf16.mxu1 %v1105_v0  ;;  %884 = vmatprep.subr.bf16.mxu0 %v883_v32  ;;  %v891_v50 = vpack.c.bf16 %v54_v46, %v51_v45  ;;  %v50_v51 = vld [vmem:[%s1860_s1 + $0xc0] sm:$0xff]  ;;  %v57_v54 = vld [vmem:[%s1860_s1 + $0xf8] sm:$0xff]  ;;  %v60_v55 = vld [vmem:[%s1860_s1 + $0x110] sm:$0xff]  ;;  %v945_v57 = vpack.c.bf16 %v73_v53, %v70_v49  ;;  %v1106_v45 = vmov 0.0  }
   0xe   :  { %v893_v56 = vpack.c.bf16 %v53_v52, %v50_v51  ;;  %v76_v58 = vld [vmem:[%s1860_s1 + $0x190] sm:$0xff]  ;;  %v895_v59 = vpack.c.bf16 %v60_v55, %v57_v54  ;;  %v59_v61 = vld [vmem:[%s1860_s1 + $0x108] sm:$0xff]  ;;  %v66_v1 = vld [vmem:[%s1860_s1 + $0x140] sm:$0xff] }
   0xf   :  { %v56_v60 = vld [vmem:[%s1860_s1 + $0xf0] sm:$0xff]  ;;  %v79_v62 = vld [vmem:[%s1860_s1 + $0x1a8] sm:$0xff]  ;;  %v82_v4 = vld [vmem:[%s1860_s1 + $0x1c0] sm:$0xff] }
  0x10   :  { %934 = vmatpush1.bf16.msra.mxu1 %v933_v19  ;;  %886 = vmatpush1.bf16.msra.mxu0 %v885_v38  ;;  %v63_v63 = vld [vmem:[%s1860_s1 + $0x128] sm:$0xff]  ;;  %v897_v2 = vpack.c.bf16 %v59_v61, %v56_v60  ;;  %v948_v3 = vpack.c.bf16 %v79_v62, %v76_v58  ;;  %v62_v6 = vld [vmem:[%s1860_s1 + $0x120] sm:$0xff]  ;;  %v65_v7 = vld [vmem:[%s1860_s1 + $0x138] sm:$0xff] }
  0x11   :  { %935 = vmatprep.subr.bf16.mxu1 %v1105_v0  ;;  %888 = vmatprep.subr.bf16.mxu0 %v887_v41  ;;  %v899_v5 = vpack.c.bf16 %v66_v1, %v63_v63  ;;  %v85_v8 = vld [vmem:[%s1860_s1 + $0x1d8] sm:$0xff]  ;;  %v72_v10 = vld [vmem:[%s1860_s1 + $0x170] sm:$0xff]  ;;  %v901_v11 = vpack.c.bf16 %v65_v7, %v62_v6  ;;  %v71_v16 = vld [vmem:[%s1860_s1 + $0x168] sm:$0xff] }
  0x12   :  { %v69_v9 = vld [vmem:[%s1860_s1 + $0x158] sm:$0xff]  ;;  %v951_v12 = vpack.c.bf16 %v85_v8, %v82_v4  ;;  %v88_v13 = vld [vmem:[%s1860_s1 + $0x1f0] sm:$0xff]  ;;  %v91_v17 = vld [vmem:[%s1860_s1 + $0x208] sm:$0xff] }
  0x13   :  { %v903_v14 = vpack.c.bf16 %v72_v10, %v69_v9  ;;  %v68_v15 = vld [vmem:[%s1860_s1 + $0x150] sm:$0xff]  ;;  %v75_v18 = vld [vmem:[%s1860_s1 + $0x188] sm:$0xff]  ;;  %v78_v19 = vld [vmem:[%s1860_s1 + $0x1a0] sm:$0xff]  ;;  %v954_v21 = vpack.c.bf16 %v91_v17, %v88_v13 }
  0x14   :  { %937 = vmatpush1.bf16.msra.mxu1 %v936_v30  ;;  %890 = vmatpush1.bf16.msra.mxu0 %v889_v47  ;;  %v905_v20 = vpack.c.bf16 %v71_v16, %v68_v15  ;;  %v94_v22 = vld [vmem:[%s1860_s1 + $0x220] sm:$0xff]  ;;  %v907_v23 = vpack.c.bf16 %v78_v19, %v75_v18  ;;  %v77_v25 = vld [vmem:[%s1860_s1 + $0x198] sm:$0xff]  ;;  %v84_v28 = vld [vmem:[%s1860_s1 + $0x1d0] sm:$0xff] }
  0x15   :  { %938 = vmatprep.subr.bf16.mxu1 %v1105_v0  ;;  %892 = vmatprep.subr.bf16.mxu0 %v891_v50  ;;  %v74_v24 = vld [vmem:[%s1860_s1 + $0x180] sm:$0xff]  ;;  %v97_v26 = vld [vmem:[%s1860_s1 + $0x238] sm:$0xff]  ;;  %v80_v32 = vld [vmem:[%s1860_s1 + $0x1b0] sm:$0xff] }
  0x16   :  { %v81_v27 = vld [vmem:[%s1860_s1 + $0x1b8] sm:$0xff]  ;;  %v909_v29 = vpack.c.bf16 %v77_v25, %v74_v24  ;;  %v957_v30 = vpack.c.bf16 %v97_v26, %v94_v22  ;;  %v83_v33 = vld [vmem:[%s1860_s1 + $0x1c8] sm:$0xff]  ;;  %v90_v35 = vld [vmem:[%s1860_s1 + $0x200] sm:$0xff] }
  0x17   :  { %v911_v31 = vpack.c.bf16 %v84_v28, %v81_v27  ;;  %v87_v34 = vld [vmem:[%s1860_s1 + $0x1e8] sm:$0xff]  ;;  %v265_v36 = vld [vmem:[%s1862_s2 + $0x18] sm:$0xff]  ;;  %v913_v38 = vpack.c.bf16 %v83_v33, %v80_v32  ;;  %v270_v40 = vld [vmem:[%s1862_s2 + $0x40] sm:$0xff] }
  0x18   :  { %940 = vmatpush1.bf16.msra.mxu1 %v939_v39  ;;  %894 = vmatpush1.bf16.msra.mxu0 %v893_v56  ;;  %v271_v37 = vld [vmem:[%s1862_s2 + $0x48] sm:$0xff]  ;;  %v264_v39 = vld [vmem:[%s1862_s2 + $0x10] sm:$0xff]  ;;  %v915_v41 = vpack.c.bf16 %v90_v35, %v87_v34  ;;  %v89_v42 = vld [vmem:[%s1860_s1 + $0x1f8] sm:$0xff] }
  0x19   :  { %941 = vmatprep.subr.bf16.mxu1 %v1105_v0  ;;  %896 = vmatprep.subr.bf16.mxu0 %v895_v59  ;;  %v277_v43 = vld [vmem:[%s1862_s2 + $0x78] sm:$0xff]  ;;  %v283_v44 = vld [vmem:[%s1862_s2 + $0xa8] sm:$0xff]  ;;  %v100_v46 = vld [vmem:[%s1860_s1 + $0x250] sm:$0xff]  ;;  %v991_v49 = vpack.c.bf16 %v271_v37, %v265_v36  ;;  %v993_v52 = vpack.c.bf16 %v270_v40, %v264_v39 }
  0x1a   :  { %v93_v47 = vld [vmem:[%s1860_s1 + $0x218] sm:$0xff]  ;;  %v1394_v50 = vld [vmem:[%s1861_s0] sm:$0xff]  ;;  %v92_v54 = vld [vmem:[%s1860_s1 + $0x210] sm:$0xff]  ;;  %v995_v55 = vpack.c.bf16 %v283_v44, %v277_v43 }
  0x1b   :  { %v1399_v51 = vld [vmem:[%s1861_s0 + $0x18] sm:$0xff]  ;;  %v276_v56 = vld [vmem:[%s1862_s2 + $0x70] sm:$0xff]  ;;  %v95_v59 = vld [vmem:[%s1860_s1 + $0x228] sm:$0xff] }
  0x1c   :  { %943 = vmatpush1.bf16.msra.mxu1 %v942_v48  ;;  %898 = vmatpush1.bf16.msra.mxu0 %v897_v2  ;;  %v96_v48 = vld [vmem:[%s1860_s1 + $0x230] sm:$0xff]  ;;  %v289_v60 = vld [vmem:[%s1862_s2 + $0xd8] sm:$0xff]  ;;  %v295_v61 = vld [vmem:[%s1862_s2 + $0x108] sm:$0xff]  ;;  %v921_v1 = vpack.c.bf16 %v95_v59, %v92_v54 }
  0x1d   :  { %944 = vmatprep.subr.bf16.mxu1 %v1105_v0  ;;  %900 = vmatprep.subr.bf16.mxu0 %v899_v5  ;;  %v919_v58 = vpack.c.bf16 %v96_v48, %v93_v47  ;;  %v1425_v62 = vld [vmem:[%s1861_s0 + $0x10] sm:$0xff]  ;;  %v999_v2 = vpack.c.bf16 %v295_v61, %v289_v60  ;;  %v294_v4 = vld [vmem:[%s1862_s2 + $0x100] sm:$0xff]  ;;  %v301_v5 = vld [vmem:[%s1862_s2 + $0x138] sm:$0xff] }
  0x1e   :  { %v307_v6 = vld [vmem:[%s1862_s2 + $0x168] sm:$0xff]  ;;  %v269_v9 = vld [vmem:[%s1862_s2 + $0x38] sm:$0xff]  ;;  %v262_v10 = vld [vmem:[%s1862_s2] sm:$0xff] }
  0x1f   :  { %v99_v7 = vld [vmem:[%s1860_s1 + $0x248] sm:$0xff]  ;;  %v1003_v15 = vpack.c.bf16 %v307_v6, %v301_v5  ;;  %v300_v16 = vld [vmem:[%s1862_s2 + $0x130] sm:$0xff]  ;;  %v306_v17 = vld [vmem:[%s1862_s2 + $0x160] sm:$0xff] }
  0x20   :  { %946 = vmatpush1.bf16.msra.mxu1 %v945_v57  ;;  %902 = vmatpush1.bf16.msra.mxu0 %v901_v11  ;;  %v282_v57 = vld [vmem:[%s1862_s2 + $0xa0] sm:$0xff]  ;;  %v263_v8 = vld [vmem:[%s1862_s2 + $0x8] sm:$0xff]  ;;  %v268_v11 = vld [vmem:[%s1862_s2 + $0x30] sm:$0xff]  ;;  %v1005_v27 = vpack.c.bf16 %v306_v17, %v300_v16 }
  0x21   :  { %947 = vmatprep.subr.bf16.mxu1 %v1105_v0  ;;  %904 = vmatprep.subr.bf16.mxu0 %v903_v14  ;;  %v997_v63 = vpack.c.bf16 %v282_v57, %v276_v56  ;;  %v281_v14 = vld [vmem:[%s1862_s2 + $0x98] sm:$0xff]  ;;  %v98_v18 = vld [vmem:[%s1860_s1 + $0x240] sm:$0xff]  ;;  %v959_v19 = vpack.c.bf16 %v269_v9, %v263_v8  ;;  %v961_v22 = vpack.c.bf16 %v268_v11, %v262_v10  ;;  %v280_v25 = vld [vmem:[%s1862_s2 + $0x90] sm:$0xff] }
  0x22   :  { %v274_v24 = vld [vmem:[%s1862_s2 + $0x60] sm:$0xff]  ;;  %v287_v26 = vld [vmem:[%s1862_s2 + $0xc8] sm:$0xff]  ;;  %v293_v28 = vld [vmem:[%s1862_s2 + $0xf8] sm:$0xff] }
  0x23   :  { %v325_v32 = vld [vmem:[%s1862_s2 + $0x1f8] sm:$0xff]  ;;  %v331_v33 = vld [vmem:[%s1862_s2 + $0x228] sm:$0xff]  ;;  %v965_v34 = vpack.c.bf16 %v280_v25, %v274_v24  ;;  %v967_v35 = vpack.c.bf16 %v293_v28, %v287_v26  ;;  %v286_v36 = vld [vmem:[%s1862_s2 + $0xc0] sm:$0xff] }
  0x24   :  { %949 = vmatpush1.bf16.msra.mxu1 %v948_v3  ;;  %906 = vmatpush1.bf16.msra.mxu0 %v905_v20  ;;  %v288_v3 = vld [vmem:[%s1862_s2 + $0xd0] sm:$0xff]  ;;  %v313_v20 = vld [vmem:[%s1862_s2 + $0x198] sm:$0xff]  ;;  %v1011_v40 = vpack.c.bf16 %v331_v33, %v325_v32  ;;  %v343_v44 = vld [vmem:[%s1862_s2 + $0x288] sm:$0xff] }
  0x25   :  { %950 = vmatprep.subr.bf16.mxu1 %v1105_v0  ;;  %908 = vmatprep.subr.bf16.mxu0 %v907_v23  ;;  %v1001_v13 = vpack.c.bf16 %v294_v4, %v288_v3  ;;  %v292_v37 = vld [vmem:[%s1862_s2 + $0xf0] sm:$0xff]  ;;  %v305_v39 = vld [vmem:[%s1862_s2 + $0x158] sm:$0xff]  ;;  %v298_v48 = vld [vmem:[%s1862_s2 + $0x120] sm:$0xff] }
  0x26   :  { %v337_v43 = vld [vmem:[%s1862_s2 + $0x258] sm:$0xff]  ;;  %v336_v54 = vld [vmem:[%s1862_s2 + $0x250] sm:$0xff]  ;;  %v355_v57 = vld [vmem:[%s1862_s2 + $0x2e8] sm:$0xff] }
  0x27   :  { %v349_v56 = vld [vmem:[%s1862_s2 + $0x2b8] sm:$0xff]  ;;  %v310_v60 = vld [vmem:[%s1862_s2 + $0x180] sm:$0xff]  ;;  %v316_v61 = vld [vmem:[%s1862_s2 + $0x1b0] sm:$0xff] }
  0x28   :  { %952 = vmatpush1.bf16.msra.mxu1 %v951_v12  ;;  %910 = vmatpush1.bf16.msra.mxu0 %v909_v29  ;;  %v275_v12 = vld [vmem:[%s1862_s2 + $0x68] sm:$0xff]  ;;  %v348_v3 = vld [vmem:[%s1862_s2 + $0x2b0] sm:$0xff]  ;;  %v354_v4 = vld [vmem:[%s1862_s2 + $0x2e0] sm:$0xff]  ;;  %v977_v5 = vpack.c.bf16 %v316_v61, %v310_v60 }
  0x29   :  { %953 = vmatprep.subr.bf16.mxu1 %v1105_v0  ;;  %912 = vmatprep.subr.bf16.mxu0 %v911_v31  ;;  %v963_v23 = vpack.c.bf16 %v281_v14, %v275_v12  ;;  %v318_v31 = vld [vmem:[%s1862_s2 + $0x1c0] sm:$0xff]  ;;  %v328_v8 = vld [vmem:[%s1862_s2 + $0x210] sm:$0xff]  ;;  %v1021_v9 = vpack.c.bf16 %v354_v4, %v348_v3  ;;  %v335_v10 = vld [vmem:[%s1862_s2 + $0x248] sm:$0xff] }
  0x2a   :  { %v341_v11 = vld [vmem:[%s1862_s2 + $0x278] sm:$0xff]  ;;  %v334_v14 = vld [vmem:[%s1862_s2 + $0x240] sm:$0xff]  ;;  %v347_v16 = vld [vmem:[%s1862_s2 + $0x2a8] sm:$0xff] }
  0x2b   :  { %v353_v17 = vld [vmem:[%s1862_s2 + $0x2d8] sm:$0xff]  ;;  %v609_v26 = vld [vmem:[%s1863_s3 + $0x80] sm:$0xff] }
  0x2c   :  { %955 = vmatpush1.bf16.msra.mxu1 %v954_v21  ;;  %914 = vmatpush1.bf16.msra.mxu0 %v913_v38  ;;  %v319_v21 = vld [vmem:[%s1862_s2 + $0x1c8] sm:$0xff]  ;;  %v273_v24 = vld [vmem:[%s1862_s2 + $0x58] sm:$0xff]  ;;  %v593_v33 = vld [vmem:[%s1863_s3] sm:$0xff] }
  0x2d   :  { %956 = vmatprep.subr.bf16.mxu1 %v1105_v0  ;;  %v86_v0 = vld [vmem:[%s1860_s1 + $0x1e0] sm:$0xff]  ;;  %916 = vmatprep.subr.bf16.mxu0 %v915_v41  ;;  %v1007_v29 = vpack.c.bf16 %v319_v21, %v313_v20  ;;  %v299_v38 = vld [vmem:[%s1862_s2 + $0x128] sm:$0xff]  ;;  %v324_v41 = vld [vmem:[%s1862_s2 + $0x1f0] sm:$0xff] }
  0x2e   :  { %v917_v53 = vpack.c.bf16 %v89_v42, %v86_v0  ;;  %v330_v42 = vld [vmem:[%s1862_s2 + $0x220] sm:$0xff]  ;;  %v971_v47 = vpack.c.bf16 %v305_v39, %v299_v38  ;;  %v352_v21 = vld [vmem:[%s1862_s2 + $0x2d0] sm:$0xff]  ;;  %v285_v32 = vld [vmem:[%s1862_s2 + $0xb8] sm:$0xff] }
  0x2f   :  { %v346_v20 = vld [vmem:[%s1862_s2 + $0x2a0] sm:$0xff]  ;;  %v284_v38 = vld [vmem:[%s1862_s2 + $0xb0] sm:$0xff] }
  0x30   :  { %958 = vmatpush1.bf16.msra.mxu1 %v957_v30  ;;  %918 = vmatpush1.bf16.msra.mxu0 %v917_v53  ;;  %v312_v30 = vld [vmem:[%s1862_s2 + $0x190] sm:$0xff]  ;;  %v1015_v53 = vpack.c.bf16 %v343_v44, %v337_v43  ;;  %v612_v43 = vld [vmem:[%s1863_s3 + $0x98] sm:$0xff]  ;;  %v597_v61 = vld [vmem:[%s1863_s3 + $0x20] sm:$0xff] }
  0x31   :  { %233 = vmatprep.subr.mxu1 %v1106_v45  ;;  %920 = vmatprep.subr.bf16.mxu0 %v919_v58  ;;  %v1009_v0 = vpack.c.bf16 %v318_v31, %v312_v30  ;;  %v272_v30 = vld [vmem:[%s1862_s2 + $0x50] sm:$0xff]  ;;  %v279_v31 = vld [vmem:[%s1862_s2 + $0x88] sm:$0xff]  ;;  %v302_v4 = vld [vmem:[%s1862_s2 + $0x140] sm:$0xff] }
  0x34   :  { %234 = vmatpush1.msra.mxu1 %v100_v46  ;;  %922 = vmatpush1.bf16.msra.mxu0 %v921_v1  ;;  %v969_v46 = vpack.c.bf16 %v292_v37, %v286_v36  ;;  %v329_v1 = vld [vmem:[%s1862_s2 + $0x218] sm:$0xff]  ;;  %v1027_v36 = vpack.c.bf16 %v285_v32, %v279_v31  ;;  %v278_v37 = vld [vmem:[%s1862_s2 + $0x80] sm:$0xff]  ;;  %v332_v31 = vld [vmem:[%s1862_s2 + $0x230] sm:$0xff] }
  0x35   :  { %250 = vmatmul.mubr.f32.vlgmr.msra.gmra.mrb[0].mxu1 %v1394_v50  ;;  %992 = vmatprep.subr.bf16.mxu1 %v991_v49  ;;  %v304_v49 = vld [vmem:[%s1862_s2 + $0x150] sm:$0xff] }
  0x36   :  { %832 = vmatprep.mubr.msk.f32.mxu1 %vm101_vm0, %v1399_v51  ;;  %994 = vmatpush1.bf16.msra.mxu1 %v993_v52  ;;  %v317_v52 = vld [vmem:[%s1862_s2 + $0x1b8] sm:$0xff]  ;;  %v973_v58 = vpack.c.bf16 %v304_v49, %v298_v48  ;;  %v1029_v48 = vpack.c.bf16 %v284_v38, %v278_v37  ;;  %v613_v49 = vld [vmem:[%s1863_s3 + $0xa0] sm:$0xff]  ;;  %v603_v38 = vld [vmem:[%s1863_s3 + $0x50] sm:$0xff] }
  0x37   :  { %996 = vmatprep.subr.bf16.mxu1 %v995_v55  ;;  %156 = vmatprep.subr.mxu0 %v99_v7  ;;  %v342_v55 = vld [vmem:[%s1862_s2 + $0x280] sm:$0xff] }
  0x38   :  { %157 = vmatpush1.msra.mxu0 %v98_v18  ;;  %v322_v7 = vld [vmem:[%s1862_s2 + $0x1e0] sm:$0xff] }
  0x39   :  { %255 = vmatmul.mubr.f32.gmra.mrb[2].mxu1 %v1425_v62  ;;  %960 = vmatprep.subr.bf16.mxu0 %v959_v19  ;;  %v981_v12 = vpack.c.bf16 %v328_v8, %v322_v7  ;;  %v987_v19 = vpack.c.bf16 %v353_v17, %v347_v16  ;;  %v321_v7 = vld [vmem:[%s1862_s2 + $0x1d8] sm:$0xff]  ;;  %v314_v16 = vld [vmem:[%s1862_s2 + $0x1a0] sm:$0xff]  ;;  %v320_v17 = vld [vmem:[%s1862_s2 + $0x1d0] sm:$0xff] }
  0x3a   :  { %998 = vmatpush1.bf16.msra.mxu1 %v997_v63  ;;  %499 = vmatprep.mubr.f32.mxu1 %v1106_v45  ;;  %v1017_v63 = vpack.c.bf16 %v342_v55, %v336_v54 }
  0x3b   :  { %1000 = vmatprep.subr.bf16.mxu1 %v999_v2  ;;  %173 = vmatmul.mubr.f32.vlgmr.msra.gmra.mrb[0].mxu0 %v1394_v50  ;;  %v311_v50 = vld [vmem:[%s1862_s2 + $0x188] sm:$0xff]  ;;  %v1019_v2 = vpack.c.bf16 %v355_v57, %v349_v56  ;;  %v309_v57 = vld [vmem:[%s1862_s2 + $0x178] sm:$0xff] }
  0x3c   :  { %962 = vmatpush1.bf16.msra.mxu0 %v961_v22  ;;  %830 = vmatprep.mubr.msk.f32.mxu0 %vm101_vm0, %v1399_v51  ;;  %v1013_v51 = vpack.c.bf16 %v330_v42, %v324_v41  ;;  %v975_v59 = vpack.c.bf16 %v317_v52, %v311_v50  ;;  %v989_v22 = vpack.c.bf16 %v352_v21, %v346_v20  ;;  %v611_v42 = vld [vmem:[%s1863_s3 + $0x90] sm:$0xff]  ;;  %v614_v50 = vld [vmem:[%s1863_s3 + $0xa8] sm:$0xff]  ;;  %v290_v52 = vld [vmem:[%s1862_s2 + $0xe0] sm:$0xff] }
  0x3d   :  { %964 = vmatprep.subr.bf16.mxu0 %v963_v23  ;;  %v267_v23 = vld [vmem:[%s1862_s2 + $0x28] sm:$0xff]  ;;  %v1059_v54 = vpack.c.bf16 %v612_v43, %v611_v42  ;;  %v1063_v60 = vpack.c.bf16 %v614_v50, %v613_v49  ;;  %v333_v20 = vld [vmem:[%s1862_s2 + $0x238] sm:$0xff] }
  0x3e   :  { %1002 = vmatpush1.bf16.msra.mxu1 %v1001_v13  ;;  %v983_v13 = vpack.c.bf16 %v341_v11, %v335_v10  ;;  %v1023_v25 = vpack.c.bf16 %v273_v24, %v267_v23  ;;  %v303_v56 = vld [vmem:[%s1862_s2 + $0x148] sm:$0xff]  ;;  %v599_v10 = vld [vmem:[%s1863_s3 + $0x30] sm:$0xff]  ;;  %v600_v11 = vld [vmem:[%s1863_s3 + $0x38] sm:$0xff] }
  0x3f   :  { %1004 = vmatprep.subr.bf16.mxu1 %v1003_v15  ;;  %179 = vmatmul.mubr.f32.gmra.mrb[2].mxu0 %v1425_v62  ;;  %v323_v62 = vld [vmem:[%s1862_s2 + $0x1e8] sm:$0xff]  ;;  %v340_v15 = vld [vmem:[%s1862_s2 + $0x270] sm:$0xff]  ;;  %v1035_v3 = vpack.c.bf16 %v309_v57, %v303_v56  ;;  %v601_v24 = vld [vmem:[%s1863_s3 + $0x40] sm:$0xff] }
  0x40   :  { %966 = vmatpush1.bf16.msra.mxu0 %v965_v34  ;;  %422 = vmatprep.mubr.f32.mxu0 %v1106_v45  ;;  %v979_v6 = vpack.c.bf16 %v329_v1, %v323_v62  ;;  %v985_v18 = vpack.c.bf16 %v340_v15, %v334_v14  ;;  %v594_v34 = vld [vmem:[%s1863_s3 + $0x8] sm:$0xff]  ;;  %v615_v1 = vld [vmem:[%s1863_s3 + $0xb0] sm:$0xff]  ;;  %v350_v56 = vld [vmem:[%s1862_s2 + $0x2c0] sm:$0xff] }
  0x41   :  { %968 = vmatprep.subr.bf16.mxu0 %v967_v35  ;;  %v1057_v41 = vpack.c.bf16 %v594_v34, %v593_v33  ;;  %v598_v62 = vld [vmem:[%s1863_s3 + $0x28] sm:$0xff]  ;;  %v345_v34 = vld [vmem:[%s1862_s2 + $0x298] sm:$0xff]  ;;  %v356_v57 = vld [vmem:[%s1862_s2 + $0x2f0] sm:$0xff] }
  0x42   :  { %1006 = vmatpush1.bf16.msra.mxu1 %v1005_v27  ;;  %v610_v27 = vld [vmem:[%s1863_s3 + $0x88] sm:$0xff]  ;;  %v1065_v8 = vpack.c.bf16 %v598_v62, %v597_v61  ;;  %v624_v61 = vld [vmem:[%s1863_s3 + $0xf8] sm:$0xff] }
  0x43   :  { %1008 = vmatprep.subr.bf16.mxu1 %v1007_v29  ;;  %v1055_v28 = vpack.c.bf16 %v610_v27, %v609_v26  ;;  %v266_v29 = vld [vmem:[%s1862_s2 + $0x20] sm:$0xff]  ;;  %v618_v14 = vld [vmem:[%s1863_s3 + $0xc8] sm:$0xff]  ;;  %v1041_v26 = vpack.c.bf16 %v320_v17, %v314_v16  ;;  %v619_v27 = vld [vmem:[%s1863_s3 + $0xd0] sm:$0xff] }
  0x44   :  { %970 = vmatpush1.bf16.msra.mxu0 %v969_v46  ;;  %v1025_v35 = vpack.c.bf16 %v272_v30, %v266_v29  ;;  %v595_v46 = vld [vmem:[%s1863_s3 + $0x10] sm:$0xff]  ;;  %v326_v30 = vld [vmem:[%s1862_s2 + $0x200] sm:$0xff]  ;;  %v339_v33 = vld [vmem:[%s1862_s2 + $0x268] sm:$0xff] }
  0x45   :  { %972 = vmatprep.subr.bf16.mxu0 %v971_v47  ;;  %v596_v47 = vld [vmem:[%s1863_s3 + $0x18] sm:$0xff]  ;;  %v622_v42 = vld [vmem:[%s1863_s3 + $0xe8] sm:$0xff]  ;;  %v1047_v43 = vpack.c.bf16 %v345_v34, %v339_v33 }
  0x46   :  { %1010 = vmatpush1.bf16.msra.mxu1 %v1009_v0  ;;  %v291_v0 = vld [vmem:[%s1862_s2 + $0xe8] sm:$0xff] }
  0x47   :  { %1012 = vmatprep.subr.bf16.mxu1 %v1011_v40  ;;  %v297_v40 = vld [vmem:[%s1862_s2 + $0x118] sm:$0xff]  ;;  %v713_v17 = vld [vmem:[%s1865_s4 + $0x8] sm:$0xff] }
  0x48   :  { %974 = vmatpush1.bf16.msra.mxu0 %v973_v58  ;;  %v1061_v58 = vpack.c.bf16 %v596_v47, %v595_v46  ;;  %v344_v46 = vld [vmem:[%s1862_s2 + $0x290] sm:$0xff]  ;;  %v351_v47 = vld [vmem:[%s1862_s2 + $0x2c8] sm:$0xff] }
  0x49   :  { %976 = vmatprep.subr.bf16.mxu0 %v975_v59 }
  0x4a   :  { %1014 = vmatpush1.bf16.msra.mxu1 %v1013_v51  ;;  %v1031_v51 = vpack.c.bf16 %v297_v40, %v291_v0  ;;  %v604_v0 = vld [vmem:[%s1863_s3 + $0x58] sm:$0xff]  ;;  %v1045_v40 = vpack.c.bf16 %v332_v31, %v326_v30 }
  0x4b   :  { %1016 = vmatprep.subr.bf16.mxu1 %v1015_v53  ;;  %v296_v53 = vld [vmem:[%s1862_s2 + $0x110] sm:$0xff]  ;;  %v1077_v49 = vpack.c.bf16 %v604_v0, %v603_v38 }
  0x4c   :  { %978 = vmatpush1.bf16.msra.mxu0 %v977_v5  ;;  %v308_v5 = vld [vmem:[%s1862_s2 + $0x170] sm:$0xff] }
  0x4d   :  { %980 = vmatprep.subr.bf16.mxu0 %v979_v6  ;;  %v315_v6 = vld [vmem:[%s1862_s2 + $0x1a8] sm:$0xff] }
  0x4e   :  { %1018 = vmatpush1.bf16.msra.mxu1 %v1017_v63  ;;  %v1033_v63 = vpack.c.bf16 %v296_v53, %v290_v52  ;;  %v1039_v15 = vpack.c.bf16 %v321_v7, %v315_v6  ;;  %v606_v52 = vld [vmem:[%s1863_s3 + $0x68] sm:$0xff] }
  0x4f   :  { %1020 = vmatprep.subr.bf16.mxu1 %v1019_v2  ;;  %v616_v2 = vld [vmem:[%s1863_s3 + $0xb8] sm:$0xff] }
  0x50   :  { %982 = vmatpush1.bf16.msra.mxu0 %v981_v12  ;;  %v1037_v12 = vpack.c.bf16 %v308_v5, %v302_v4 }
  0x51   :  { %984 = vmatprep.subr.bf16.mxu0 %v983_v13  ;;  %v617_v13 = vld [vmem:[%s1863_s3 + $0xc0] sm:$0xff] }
  0x52   :  { %1022 = vmatpush1.bf16.msra.mxu1 %v1021_v9  ;;  %v1067_v9 = vpack.c.bf16 %v616_v2, %v615_v1  ;;  %v1071_v23 = vpack.c.bf16 %v618_v14, %v617_v13 }
  0x53   :  { %1056 = vmatprep.subr.bf16.mxu1 %v1055_v28  ;;  %v620_v28 = vld [vmem:[%s1863_s3 + $0xd8] sm:$0xff] }
  0x54   :  { %986 = vmatpush1.bf16.msra.mxu0 %v985_v18  ;;  %v1075_v37 = vpack.c.bf16 %v620_v28, %v619_v27 }
  0x55   :  { %988 = vmatprep.subr.bf16.mxu0 %v987_v19  ;;  %v327_v19 = vld [vmem:[%s1862_s2 + $0x208] sm:$0xff] }
  0x56   :  { %v1043_v29 = vpack.c.bf16 %v333_v20, %v327_v19  ;;  %v712_v20 = vld [vmem:[%s1865_s4] sm:$0xff] }
  0x58   :  { %990 = vmatpush1.bf16.msra.mxu0 %v989_v22  ;;  %v1069_v22 = vpack.c.bf16 %v600_v11, %v599_v10 }
  0x59   :  { %1024 = vmatprep.subr.bf16.mxu0 %v1023_v25  ;;  %v602_v25 = vld [vmem:[%s1863_s3 + $0x48] sm:$0xff] }
 0x108   :  { %v1641_v39 = vpop.f32.mrb[0].mxu1 }
 0x109   :  { %260 = vst [vmem:[%s1864_s6] sm:$0xff] %v1641_v39  ;;  %v253_v44 = vpop.f32.mrb[1].mxu1  ;;  %423 = vmatmul.mubr.f32.vlgmr.msra.gmra.mrb[4].mxu0 %v1641_v39  ;;  %500 = vmatmul.mubr.f32.vlgmr.msra.gmra.mrb[4].mxu1 %v1641_v39 }
 0x10a   :  { %1026 = vmatpush1.bf16.msra.mxu0 %v1025_v35  ;;  %428 = vmatprep.mubr.f32.mxu0 %v1106_v45  ;;  %v1073_v35 = vpack.c.bf16 %v602_v25, %v601_v24  ;;  %v338_v44 = vld [vmem:[%s1862_s2 + $0x260] sm:$0xff] }
 0x10b   :  { %505 = vmatprep.mubr.f32.mxu1 %v1106_v45  ;;  %1028 = vmatprep.subr.bf16.mxu0 %v1027_v36  ;;  %v1049_v53 = vpack.c.bf16 %v344_v46, %v338_v44 }
 0x10c   :  { %v1678_v55 = vpop.f32.mrb[2].mxu1  ;;  %1058 = vmatpush3.bf16.msra.mxu1 %v1057_v41  ;;  %v621_v41 = vld [vmem:[%s1863_s3 + $0xe0] sm:$0xff] }
 0x10d   :  { %261 = vst [vmem:[%s1864_s6 + $0x8] sm:$0xff] %v1678_v55  ;;  %v258_v59 = vpop.f32.mrb[3].mxu1  ;;  %429 = vmatmul.mubr.f32.gmra.mrb[6].mxu0 %v1678_v55  ;;  %506 = vmatmul.mubr.f32.gmra.mrb[6].mxu1 %v1678_v55  ;;  %v1079_v50 = vpack.c.bf16 %v622_v42, %v621_v41 }
 0x10e   :  { %1030 = vmatpush1.bf16.msra.mxu0 %v1029_v48  ;;  %576 = vmatprep.mubr.f32.mxu0 %v1106_v45  ;;  %v1735_v18 = vpop.f32.mrb[0].mxu0  ;;  %v357_v48 = vld [vmem:[%s1862_s2 + $0x2f8] sm:$0xff]  ;;  %v1053_v59 = vpack.c.bf16 %v356_v57, %v350_v56 }
 0x10f   :  { %1032 = vmatprep.subr.bf16.mxu0 %v1031_v51  ;;  %1060 = vmatprep.subr.bf16.mxu1 %v1059_v54  ;;  %v1743_v21 = vpop.f32.mrb[1].mxu0  ;;  %v605_v51 = vld [vmem:[%s1863_s3 + $0x60] sm:$0xff]  ;;  %v1051_v54 = vpack.c.bf16 %v357_v48, %v351_v47 }
 0x110   :  { %1062 = vmatpush3.bf16.msra.mxu1 %v1061_v58  ;;  %v1081_v58 = vpack.c.bf16 %v606_v52, %v605_v51 }
 0x111   :  { %1064 = vmatprep.subr.bf16.mxu1 %v1063_v60  ;;  %v623_v60 = vld [vmem:[%s1863_s3 + $0xf0] sm:$0xff] }
 0x112   :  { %1034 = vmatpush1.bf16.msra.mxu0 %v1033_v63  ;;  %v180_v32 = vpop.f32.mrb[2].mxu0  ;;  %v1083_v62 = vpack.c.bf16 %v624_v61, %v623_v60  ;;  %v607_v63 = vld [vmem:[%s1863_s3 + $0x70] sm:$0xff] }
 0x113   :  { %1036 = vmatprep.subr.bf16.mxu0 %v1035_v3  ;;  %v182_v36 = vpop.f32.mrb[3].mxu0 }
 0x114   :  { %1066 = vmatpush3.bf16.msra.mxu1 %v1065_v8 }
 0x115   :  { %1068 = vmatprep.subr.bf16.mxu1 %v1067_v9 }
 0x116   :  { %1038 = vmatpush1.bf16.msra.mxu0 %v1037_v12 }
 0x117   :  { %1040 = vmatprep.subr.bf16.mxu0 %v1039_v15 }
 0x118   :  { %1070 = vmatpush3.bf16.msra.mxu1 %v1069_v22  ;;  %v717_v22 = vld [vmem:[%s1865_s4 + $0x28] sm:$0xf] }
 0x119   :  { %1072 = vmatprep.subr.bf16.mxu1 %v1071_v23  ;;  %v716_v23 = vld [vmem:[%s1865_s4 + $0x20] sm:$0xf] }
 0x11a   :  { %1042 = vmatpush1.bf16.msra.mxu0 %v1041_v26 }
 0x11b   :  { %1044 = vmatprep.subr.bf16.mxu0 %v1043_v29 }
 0x11c   :  { %1074 = vmatpush3.bf16.msra.mxu1 %v1073_v35 }
 0x11d   :  { %1076 = vmatprep.subr.bf16.mxu1 %v1075_v37 }
 0x11e   :  { %1046 = vmatpush1.bf16.msra.mxu0 %v1045_v40 }
 0x11f   :  { %1048 = vmatprep.subr.bf16.mxu0 %v1047_v43 }
 0x120   :  { %1078 = vmatpush3.bf16.msra.mxu1 %v1077_v49 }
 0x121   :  { %1080 = vmatprep.subr.bf16.mxu1 %v1079_v50 }
 0x122   :  { %1050 = vmatpush1.bf16.msra.mxu0 %v1049_v53 }
 0x123   :  { %1052 = vmatprep.subr.bf16.mxu0 %v1051_v54 }
 0x124   :  { %1082 = vmatpush3.bf16.msra.mxu1 %v1081_v58 }
 0x125   :  { %1084 = vmatprep.subr.bf16.mxu1 %v1083_v62 }
 0x126   :  { %1054 = vmatpush1.bf16.msra.mxu0 %v1053_v59 }
 0x129   :  { %577 = vmatmul.mubr.f32.vlgmr.msra.gmra.mrb[8].mxu0 %v1641_v39  ;;  %v608_v39 = vld [vmem:[%s1863_s3 + $0x78] sm:$0xff] }
 0x12a   :  { %582 = vmatprep.mubr.f32.mxu0 %v1106_v45 }
 0x12d   :  { %583 = vmatmul.mubr.f32.gmra.mrb[10].mxu0 %v1678_v55  ;;  %v1085_v55 = vpack.c.bf16 %v608_v39, %v607_v63 }
 0x12e   :  { %796 = vmatprep.mubr.f32.mxu0 %v1106_v45 }
 0x12f   :  { %1086 = vmatpush3.bf16.msra.mxu1 %v1085_v55 }
 0x1dc   :  { %v424_v1 = vpop.f32.mrb[4].mxu0  ;;  %v501_v2 = vpop.f32.mrb[4].mxu1 }
 0x1dd   :  { %v589_v3 = vmul.f32 %v424_v1, %v1735_v18  ;;  %v426_v4 = vpop.f32.mrb[5].mxu0  ;;  %v503_v5 = vpop.f32.mrb[5].mxu1  ;;  %v715_v18 = vld [vmem:[%s1865_s4 + $0x18] sm:$0xff] }
 0x1de   :  { %v590_v6 = vmul.f32 %v426_v4, %v1743_v21  ;;  %v1087_v19 = vpack.c.bf16 %v715_v18, %v713_v17 }
 0x1e0   :  { %v430_v7 = vpop.f32.mrb[6].mxu0  ;;  %v1823_v8 = vpop.f32.mrb[6].mxu1  ;;  %689 = vmatprep.mubr.f32.mxu1 %v590_v6  ;;  %1088 = vmatprep.subr.bf16.mxu0 %v1087_v19 }
 0x1e1   :  { %v591_v9 = vmul.f32 %v430_v7, %v180_v32  ;;  %v432_v10 = vpop.f32.mrb[7].mxu0  ;;  %v1825_v11 = vpop.f32.mrb[7].mxu1  ;;  %690 = vmatmul.mubr.f32.vlgmr.msra.gmra.mrb[8].mxu1 %v589_v3  ;;  %1091 = vmatprep.subr.bf16.mxu1 %v1087_v19 }
 0x1e2   :  { %v592_v12 = vmul.f32 %v432_v10, %v182_v36 }
 0x1e4   :  { %694 = vmatprep.mubr.f32.mxu1 %v592_v12 }
 0x1e5   :  { %695 = vmatmul.mubr.f32.gmra.mrb[10].mxu1 %v591_v9 }
 0x1e6   :  { %802 = vmatprep.mubr.f32.mxu1 %v1106_v45  ;;  %v714_v45 = vld [vmem:[%s1865_s4 + $0x10] sm:$0xff] }
 0x1e7   :  { %v1089_v21 = vpack.c.bf16 %v714_v45, %v712_v20 }
 0x1e9   :  { %1090 = vmatpush1.bf16.msra.mxu0 %v1089_v21  ;;  %1093 = vmatpush1.bf16.msra.mxu1 %v1089_v21 }
 0x1ea   :  { %833 = vmatprep.subr.msk.mxu0 %vm725_vm1, %v717_v22  ;;  %1092 = vmatprep.subr.msk.mxu1 %vm725_vm1, %v717_v22 }
 0x1ed   :  { %834 = vmatpush1.msk.msra.mxu0 %vm725_vm1, %v716_v23  ;;  %1094 = vmatpush1.msk.msra.mxu1 %vm725_vm1, %v716_v23 }
 0x1fc   :  { %v578_v13 = vpop.f32.mrb[8].mxu0 }
 0x1fd   :  { %v580_v14 = vpop.f32.mrb[9].mxu0 }
 0x200   :  { %v584_v15 = vpop.f32.mrb[10].mxu0 }
 0x201   :  { %v586_v16 = vpop.f32.mrb[11].mxu0 }
 0x2b4   :  { %v869_v24 = vpop.f32.mrb[8].mxu1 }
 0x2b5   :  { %v870_v25 = vpop.f32.mrb[9].mxu1 }
 0x2b6   :  { %v871_v26 = vadd.f32 %v870_v25, %v869_v24 }
 0x2b8   :  { %v700_v27 = vsub.f32 0.0, %v871_v26  ;;  %v872_v28 = vpop.f32.mrb[10].mxu1 }
 0x2b9   :  { %v873_v29 = vpop.f32.mrb[11].mxu1 }
 0x2ba   :  { %v702_v30 = vmul.f32 1.442695, %v700_v27  ;;  %v874_v31 = vadd.f32 %v873_v29, %v872_v28 }
 0x2bc   :  { %1097 = vpow2.f32 %v702_v30  ;;  %v701_v32 = vsub.f32 0.0, %v874_v31 }
 0x2be   :  { %v704_v33 = vmul.f32 1.442695, %v701_v32 }
 0x2c0   :  { %1099 = vpow2.f32 %v704_v33 }
 0x2c6   :  { %v1098_v34 = vpop.eup %1097 }
 0x2c7   :  { %v706_v35 = vadd.f32 1.0, %v1098_v34 }
 0x2c9   :  { %1101 = vrcp.f32 %v706_v35 }
 0x2ca   :  { %v1100_v36 = vpop.eup %1099 }
 0x2cb   :  { %v707_v37 = vadd.f32 1.0, %v1100_v36 }
 0x2cd   :  { %1103 = vrcp.f32 %v707_v37 }
 0x2d3   :  { %v1102_v38 = vpop.eup %1101 }
 0x2d4   :  { %835 = vmatmul.mubr.msk.f32.vlgmr.msra.gmra.mrb[12].mxu0 %vm718_vm2, %v1102_v38 }
 0x2d7   :  { %v1104_v0 = vpop.eup %1103 }
 0x2d8   :  { %836 = vmatmul.mubr.msk.f32.vlgmr.msra.gmra.mrb[12].mxu1 %vm718_vm2, %v1104_v0 }
 0x3a7   :  { %v798_v40 = vpop.f32.mrb[12].mxu0 }
 0x3a8   :  { %v809_v41 = vmul.f32 %v798_v40, %v501_v2  ;;  %v800_v42 = vpop.f32.mrb[13].mxu0 }
 0x3a9   :  { %v810_v43 = vmul.f32 %v800_v42, %v503_v5 }
 0x3aa   :  { %v813_v44 = vadd.f32 %v809_v41, %v578_v13 }
 0x3ab   :  { %v814_v46 = vadd.f32 %v810_v43, %v580_v14  ;;  %v804_v47 = vpop.f32.mrb[12].mxu1 }
 0x3ac   :  { %817 = vst [vmem:[%s1866_s5] sm:$0xff] %v813_v44  ;;  %v811_v48 = vmul.f32 %v804_v47, %v1823_v8  ;;  %v806_v49 = vpop.f32.mrb[13].mxu1 }
 0x3ad   :  { %818 = vst [vmem:[%s1866_s5 + $0x8] sm:$0xff] %v814_v46  ;;  %v812_v50 = vmul.f32 %v806_v49, %v1825_v11 }
 0x3ae   :  { %v815_v51 = vadd.f32 %v811_v48, %v584_v15 }
 0x3af   :  { %v816_v52 = vadd.f32 %v812_v50, %v586_v16 }
 0x3b0   :  { %819 = vst [vmem:[%s1866_s5 + $0x10] sm:$0xff] %v815_v51 }
 0x3b1   :  { %820 = vst [vmem:[%s1866_s5 + $0x18] sm:$0xff] %v816_v52 }

</bundles_post_ra>
